<compile_context>
chip_gen: v7x
topology: tpu7x:2x2x1
jax: 0.10.0
libtpu: 0.0.40
codegen_flags: <defaults>
</compile_context>

<pallas_src>
import collections
import functools

import jax
import jax.numpy as jnp
from jax.experimental import pallas as pl
from jax.experimental.pallas import tpu as pltpu


_NEG_BIG = -1e30  # bias for padded vocab columns (acts like -inf in logsumexp)

Dims = collections.namedtuple("Dims", "E F H T FP HP TP")


def _round_up(x, m):
    return (x + m - 1) // m * m


def _vmem_limit_bytes():
    # Generation-aware VMEM budget (~70% of physical capacity); conservative
    # fallback if hardware introspection is unavailable.
    try:
        return int(pltpu.get_tpu_info().vmem_capacity_bytes * 0.70)
    except Exception:
        return 48 * 1024 * 1024


def _pick_batch_tile(B):
    """Batch tile: fill the 256-wide MXU when the batch allows it, keep >= 2
    grid steps so the 'parallel' batch axis can shard across v7x's 2
    TensorCores, and stay a multiple of 8 sublanes."""
    if B >= 512:
        return 256
    if B >= 16:
        return min(256, _round_up((B + 1) // 2, 8))
    return _round_up(B, 8)


def fnn_kernel(emb_ref, w2_ref, b2_ref, wd_ref, w3_ref, bcat_ref, o_ref):
    emb = emb_ref[...]                                       # (TB, FP) bf16

    # Direct connection: issues on the MXU and can overlap the tanh below.
    out = jnp.dot(emb, wd_ref[...], preferred_element_type=jnp.float32)

    # fc2 -> tanh.  Bias add in f32, tanh on the bf16 value (h feeds a bf16
    # matmul anyway; packed bf16 EUP path on v6e/v7x, widened on v5e).
    h = jnp.dot(emb, w2_ref[...], preferred_element_type=jnp.float32)
    h = jnp.tanh((h + b2_ref[...]).astype(jnp.bfloat16))     # (TB, HP) bf16

    # fc3 + combined bias (b3 + bd, padded vocab columns ~= -inf).
    out = out + jnp.dot(h, w3_ref[...], preferred_element_type=jnp.float32)
    out = out + bcat_ref[...]                                # (TB, TP) f32

    # LogSoftmax over the (padded) vocab dim (== nn.LogSoftmax dim=1).
    # Store out - (m + lse) so the shifted copy of `out` dies after the exp.
    m = jnp.max(out, axis=-1, keepdims=True)
    lse = m + jnp.log(jnp.sum(jnp.exp(out - m), axis=-1, keepdims=True))
    o_ref[...] = out - lse
    # TODO(synk): for realistic vocab sizes, tile the vocab on a second
    # ('arbitrary') grid axis with a two-pass / online logsumexp instead of
    # keeping the full (F, T) / (H, T) weights VMEM-resident.


def prepare_params(params):
    """One-time padding / bf16 casting of the weights (hoisted out of the
    per-call path so the pallas_call is the only per-step HBM consumer)."""
    emb_table = params["embedding"]          # (T, E)
    w2, b2 = params["w2"], params["b2"]      # (F, H), (1, H)
    w3, b3 = params["w3"], params["b3"]      # (H, T), (1, T)
    wd, bd = params["wd"], params["bd"]      # (F, T), (1, T)

    T, E = emb_table.shape
    F, H = w2.shape

    FP = _round_up(F, 128)
    HP = _round_up(H, 128)
    TP = _round_up(T, 128)

    # Padded rows/cols are exactly zero, so padded hidden units come out as
    # tanh(0) = 0 and contribute nothing downstream.
    w2p = jnp.pad(w2, ((0, FP - F), (0, HP - H))).astype(jnp.bfloat16)
    b2p = jnp.pad(b2.astype(jnp.float32), ((0, 0), (0, HP - H)))
    wdp = jnp.pad(wd, ((0, FP - F), (0, TP - T))).astype(jnp.bfloat16)
    w3p = jnp.pad(w3, ((0, HP - H), (0, TP - T))).astype(jnp.bfloat16)

    # Combined bias (b3 + bd); padded vocab columns get a huge negative so they
    # vanish from the softmax normalizer.
    bcat = jnp.full((1, TP), _NEG_BIG, jnp.float32)
    bcat = bcat.at[:, :T].set((b3 + bd).astype(jnp.float32))

    prep = {
        "emb_table": emb_table.astype(jnp.bfloat16),  # bf16 gather: half the bytes
        "w2p": w2p, "b2p": b2p, "wdp": wdp, "w3p": w3p, "bcat": bcat,
    }
    return prep, Dims(E=E, F=F, H=H, T=T, FP=FP, HP=HP, TP=TP)


def _const_spec(shape, single_buffer):
    """BlockSpec for a block whose index_map is constant across the grid."""
    idx = lambda i: (0,) * len(shape)
    if single_buffer:
        return pl.BlockSpec(shape, idx, pipeline_mode=pl.Buffered(1))
    return pl.BlockSpec(shape, idx)


@functools.partial(jax.jit, static_argnames=("dims", "single_buffer_weights"))
def _forward(tokens, prep, dims, single_buffer_weights):
    F, T = dims.F, dims.T
    FP, HP, TP = dims.FP, dims.HP, dims.TP

    B, _ = tokens.shape
    TB = _pick_batch_tile(B)
    BP = _round_up(B, TB)

    # Embedding gather + flatten (== PyTorch .view(B, -1)), padded to tile size.
    # TODO(synk): move the gather in-kernel (tokens via PrefetchScalarGridSpec +
    # per-row DMA) so the (BP, FP) bf16 intermediate is not materialized in HBM.
    emb = jnp.take(prep["emb_table"], tokens, axis=0).reshape(B, F)
    emb = jnp.pad(emb, ((0, BP - B), (0, FP - F)))

    sb = single_buffer_weights
    out = pl.pallas_call(
        fnn_kernel,
        out_shape=jax.ShapeDtypeStruct((BP, TP), jnp.float32),
        grid=(BP // TB,),
        in_specs=[
            pl.BlockSpec((TB, FP), lambda i: (i, 0)),   # emb tile (pipelined)
            _const_spec((FP, HP), sb),                  # w2    (VMEM-resident)
            _const_spec((1, HP), sb),                   # b2
            _const_spec((FP, TP), sb),                  # wd (direct connection)
            _const_spec((HP, TP), sb),                  # w3
            _const_spec((1, TP), sb),                   # b3 + bd (+ -inf pad)
        ],
        out_specs=pl.BlockSpec((TB, TP), lambda i: (i, 0)),
        compiler_params=pltpu.CompilerParams(
            dimension_semantics=("parallel",),
            vmem_limit_bytes=_vmem_limit_bytes(),
        ),
    )(emb, prep["w2p"], prep["b2p"], prep["wdp"], prep["w3p"], prep["bcat"])

    return out[:B, :T]


def fnn_forward(tokens, prep, dims):
    """Forward pass.  Prefers single-buffered resident weights (halves their
    VMEM footprint -- v7x-friendly); falls back to default double-buffered
    pipelining if the installed jax rejects pl.Buffered(1) for inputs."""
    try:
        return _forward(tokens, prep, dims, True)
    except Exception:
        return _forward(tokens, prep, dims, False)


def init_params(key, token_num, max_len, embedding_dim, hidden_dim):
    """Deterministic synthetic parameters (shapes match FNNModel.__init__)."""
    F = max_len * embedding_dim
    ks = jax.random.split(key, 7)
    scale = 0.05
    return {
        "embedding": scale * jax.random.normal(ks[0], (token_num, embedding_dim), jnp.float32),
        # Linear weights stored as (in, out) == PyTorch weight.T
        "w2": scale * jax.random.normal(ks[1], (F, hidden_dim), jnp.float32),
        "b2": scale * jax.random.normal(ks[2], (1, hidden_dim), jnp.float32),
        "w3": scale * jax.random.normal(ks[3], (hidden_dim, token_num), jnp.float32),
        "b3": scale * jax.random.normal(ks[4], (1, token_num), jnp.float32),
        "wd": scale * jax.random.normal(ks[5], (F, token_num), jnp.float32),
        "bd": scale * jax.random.normal(ks[6], (1, token_num), jnp.float32),
    }


def fnn_reference(tokens, params):
    emb = params["embedding"][tokens].reshape(tokens.shape[0], -1)
    h = jnp.tanh(emb @ params["w2"] + params["b2"])
    out = h @ params["w3"] + params["b3"]
    out = out + emb @ params["wd"] + params["bd"]
    return jax.nn.log_softmax(out, axis=-1)


if __name__ == "__main__":
    token_num = 64
    max_len = 8
    embedding_dim = 30
    hidden_dim = 32
    batch = 2

    key = jax.random.PRNGKey(0)
    k_in, k_par = jax.random.split(key)
    tokens = jax.random.randint(k_in, (batch, max_len), 0, token_num, dtype=jnp.int32)
    params = init_params(k_par, token_num, max_len, embedding_dim, hidden_dim)

    prep, dims = prepare_params(params)       # one-time padding / casting
    out = jax.block_until_ready(fnn_forward(tokens, prep, dims))
    ref = fnn_reference(tokens, params)

    assert out.shape == (batch, token_num)
    # bf16 matmuls vs f32 reference -> relaxed tolerance.
    assert bool(jnp.allclose(out, ref, atol=1e-2, rtol=1e-2)), (
        "max abs diff = %f" % float(jnp.max(jnp.abs(out - ref))))

    print("KERNEL_OK")
</pallas_src>

<mosaic_0001>
module attributes {stable_mosaic.version = 11 : i64} {
  func.func @fnn_kernel(%arg0: i32, %arg1: memref<8x256xbf16, #tpu.memory_space<vmem>>, %arg2: memref<256x128xbf16, #tpu.memory_space<vmem>>, %arg3: memref<1x128xf32, #tpu.memory_space<vmem>>, %arg4: memref<256x128xbf16, #tpu.memory_space<vmem>>, %arg5: memref<128x128xbf16, #tpu.memory_space<vmem>>, %arg6: memref<1x128xf32, #tpu.memory_space<vmem>>, %arg7: memref<8x128xf32, #tpu.memory_space<vmem>>) attributes {dimension_semantics = [#tpu.dimension_semantics<parallel>], iteration_bounds = array<i64: 1>, scalar_prefetch = 0 : i64, scratch_operands = 0 : i64, tpu.core_type = #tpu.core_type<tc>, window_params = [{transform_indices = @transform_0, window_bounds = array<i64: 8, 256>}, {pipeline_mode = #tpu.pipeline_mode<synchronous>, transform_indices = @transform_1, window_bounds = array<i64: 256, 128>}, {pipeline_mode = #tpu.pipeline_mode<synchronous>, transform_indices = @transform_2, window_bounds = array<i64: 1, 128>}, {pipeline_mode = #tpu.pipeline_mode<synchronous>, transform_indices = @transform_3, window_bounds = array<i64: 256, 128>}, {pipeline_mode = #tpu.pipeline_mode<synchronous>, transform_indices = @transform_4, window_bounds = array<i64: 128, 128>}, {pipeline_mode = #tpu.pipeline_mode<synchronous>, transform_indices = @transform_5, window_bounds = array<i64: 1, 128>}, {transform_indices = @transform_6, window_bounds = array<i64: 8, 128>}]} {
    %c0 = arith.constant 0 : index
    %c0_0 = arith.constant 0 : index
    %0 = vector.load %arg1[%c0, %c0_0] : memref<8x256xbf16, #tpu.memory_space<vmem>>, vector<8x256xbf16>
    %c0_1 = arith.constant 0 : index
    %c0_2 = arith.constant 0 : index
    %1 = vector.load %arg4[%c0_1, %c0_2] : memref<256x128xbf16, #tpu.memory_space<vmem>>, vector<256x128xbf16>
    %cst = arith.constant dense<0.000000e+00> : vector<8x128xf32>
    %2 = tpu.matmul %0, %1, %cst {dimension_numbers = #tpu.dot_dimension_numbers<[1], [0], [0], [1], [0, 0, 1, 1], [], []>} : vector<8x256xbf16>, vector<256x128xbf16>, vector<8x128xf32> -> vector<8x128xf32>
    %c0_3 = arith.constant 0 : index
    %c0_4 = arith.constant 0 : index
    %3 = vector.load %arg2[%c0_3, %c0_4] : memref<256x128xbf16, #tpu.memory_space<vmem>>, vector<256x128xbf16>
    %cst_5 = arith.constant dense<0.000000e+00> : vector<8x128xf32>
    %4 = tpu.matmul %0, %3, %cst_5 {dimension_numbers = #tpu.dot_dimension_numbers<[1], [0], [0], [1], [0, 0, 1, 1], [], []>} : vector<8x256xbf16>, vector<256x128xbf16>, vector<8x128xf32> -> vector<8x128xf32>
    %c0_6 = arith.constant 0 : index
    %c0_7 = arith.constant 0 : index
    %5 = vector.load %arg3[%c0_6, %c0_7] : memref<1x128xf32, #tpu.memory_space<vmem>>, vector<1x128xf32>
    %6 = vector.broadcast %5 : vector<1x128xf32> to vector<8x128xf32>
    %7 = arith.addf %4, %6 : vector<8x128xf32>
    %8 = arith.truncf %7 : vector<8x128xf32> to vector<8x128xbf16>
    %9 = math.tanh %8 : vector<8x128xbf16>
    %c0_8 = arith.constant 0 : index
    %c0_9 = arith.constant 0 : index
    %10 = vector.load %arg5[%c0_8, %c0_9] : memref<128x128xbf16, #tpu.memory_space<vmem>>, vector<128x128xbf16>
    %cst_10 = arith.constant dense<0.000000e+00> : vector<8x128xf32>
    %11 = tpu.matmul %9, %10, %cst_10 {dimension_numbers = #tpu.dot_dimension_numbers<[1], [0], [0], [1], [0, 0, 1, 1], [], []>} : vector<8x128xbf16>, vector<128x128xbf16>, vector<8x128xf32> -> vector<8x128xf32>
    %12 = arith.addf %2, %11 : vector<8x128xf32>
    %c0_11 = arith.constant 0 : index
    %c0_12 = arith.constant 0 : index
    %13 = vector.load %arg6[%c0_11, %c0_12] : memref<1x128xf32, #tpu.memory_space<vmem>>, vector<1x128xf32>
    %14 = vector.broadcast %13 : vector<1x128xf32> to vector<8x128xf32>
    %15 = arith.addf %12, %14 : vector<8x128xf32>
    %cst_13 = arith.constant dense<0xFF800000> : vector<8xf32>
    %16 = vector.multi_reduction <maximumf>, %15, %cst_13 [1] : vector<8x128xf32> to vector<8xf32>
    %17 = vector.shape_cast %16 : vector<8xf32> to vector<8x1xf32>
    %18 = vector.broadcast %17 : vector<8x1xf32> to vector<8x128xf32>
    %19 = arith.subf %15, %18 : vector<8x128xf32>
    %20 = math.exp %19 : vector<8x128xf32>
    %cst_14 = arith.constant dense<0.000000e+00> : vector<8xf32>
    %21 = vector.multi_reduction <add>, %20, %cst_14 [1] : vector<8x128xf32> to vector<8xf32>
    %22 = vector.shape_cast %21 : vector<8xf32> to vector<8x1xf32>
    %23 = math.log %22 : vector<8x1xf32>
    %24 = arith.addf %17, %23 : vector<8x1xf32>
    %25 = vector.broadcast %24 : vector<8x1xf32> to vector<8x128xf32>
    %26 = arith.subf %15, %25 : vector<8x128xf32>
    %c0_15 = arith.constant 0 : index
    %c0_16 = arith.constant 0 : index
    %27 = vector.load %arg7[%c0_15, %c0_16] : memref<8x128xf32, #tpu.memory_space<vmem>>, vector<8x128xf32>
    tpu.vector_store %arg7[%c0_15, %c0_16], %26 {strides = array<i32>} : memref<8x128xf32, #tpu.memory_space<vmem>>, vector<8x128xf32>,
    return
  }
  func.func @transform_0(%arg0: i32) -> (i32, i32) {
    %c0_i32 = arith.constant 0 : i32
    %c0_i32_0 = arith.constant 0 : i32
    return %arg0, %c0_i32 : i32, i32
  }
  func.func @transform_1(%arg0: i32) -> (i32, i32) {
    %c0_i32 = arith.constant 0 : i32
    %c0_i32_0 = arith.constant 0 : i32
    %c0_i32_1 = arith.constant 0 : i32
    return %c0_i32, %c0_i32_0 : i32, i32
  }
  func.func @transform_2(%arg0: i32) -> (i32, i32) {
    %c0_i32 = arith.constant 0 : i32
    %c0_i32_0 = arith.constant 0 : i32
    %c0_i32_1 = arith.constant 0 : i32
    return %c0_i32, %c0_i32_0 : i32, i32
  }
  func.func @transform_3(%arg0: i32) -> (i32, i32) {
    %c0_i32 = arith.constant 0 : i32
    %c0_i32_0 = arith.constant 0 : i32
    %c0_i32_1 = arith.constant 0 : i32
    return %c0_i32, %c0_i32_0 : i32, i32
  }
  func.func @transform_4(%arg0: i32) -> (i32, i32) {
    %c0_i32 = arith.constant 0 : i32
    %c0_i32_0 = arith.constant 0 : i32
    %c0_i32_1 = arith.constant 0 : i32
    return %c0_i32, %c0_i32_0 : i32, i32
  }
  func.func @transform_5(%arg0: i32) -> (i32, i32) {
    %c0_i32 = arith.constant 0 : i32
    %c0_i32_0 = arith.constant 0 : i32
    %c0_i32_1 = arith.constant 0 : i32
    return %c0_i32, %c0_i32_0 : i32, i32
  }
  func.func @transform_6(%arg0: i32) -> (i32, i32) {
    %c0_i32 = arith.constant 0 : i32
    %c0_i32_0 = arith.constant 0 : i32
    return %arg0, %c0_i32 : i32, i32
  }
}

module attributes {stable_mosaic.version = 11 : i64} {
  func.func @fnn_kernel(%arg0: i32, %arg1: memref<8x256xbf16, #tpu.memory_space<vmem>>, %arg2: memref<256x128xbf16, #tpu.memory_space<vmem>>, %arg3: memref<1x128xf32, #tpu.memory_space<vmem>>, %arg4: memref<256x128xbf16, #tpu.memory_space<vmem>>, %arg5: memref<128x128xbf16, #tpu.memory_space<vmem>>, %arg6: memref<1x128xf32, #tpu.memory_space<vmem>>, %arg7: memref<8x128xf32, #tpu.memory_space<vmem>>) attributes {dimension_semantics = [#tpu.dimension_semantics<parallel>], iteration_bounds = array<i64: 1>, scalar_prefetch = 0 : i64, scratch_operands = 0 : i64, tpu.core_type = #tpu.core_type<tc>, window_params = [{transform_indices = @transform_0, window_bounds = array<i64: 8, 256>}, {pipeline_mode = #tpu.pipeline_mode<synchronous>, transform_indices = @transform_1, window_bounds = array<i64: 256, 128>}, {pipeline_mode = #tpu.pipeline_mode<synchronous>, transform_indices = @transform_2, window_bounds = array<i64: 1, 128>}, {pipeline_mode = #tpu.pipeline_mode<synchronous>, transform_indices = @transform_3, window_bounds = array<i64: 256, 128>}, {pipeline_mode = #tpu.pipeline_mode<synchronous>, transform_indices = @transform_4, window_bounds = array<i64: 128, 128>}, {pipeline_mode = #tpu.pipeline_mode<synchronous>, transform_indices = @transform_5, window_bounds = array<i64: 1, 128>}, {transform_indices = @transform_6, window_bounds = array<i64: 8, 128>}]} {
    %c0 = arith.constant 0 : index
    %c0_0 = arith.constant 0 : index
    %0 = vector.load %arg1[%c0, %c0_0] : memref<8x256xbf16, #tpu.memory_space<vmem>>, vector<8x256xbf16>
    %c0_1 = arith.constant 0 : index
    %c0_2 = arith.constant 0 : index
    %1 = vector.load %arg4[%c0_1, %c0_2] : memref<256x128xbf16, #tpu.memory_space<vmem>>, vector<256x128xbf16>
    %cst = arith.constant dense<0.000000e+00> : vector<8x128xf32>
    %2 = tpu.matmul %0, %1, %cst {dimension_numbers = #tpu.dot_dimension_numbers<[1], [0], [0], [1], [0, 0, 1, 1], [], []>} : vector<8x256xbf16>, vector<256x128xbf16>, vector<8x128xf32> -> vector<8x128xf32>
    %c0_3 = arith.constant 0 : index
    %c0_4 = arith.constant 0 : index
    %3 = vector.load %arg2[%c0_3, %c0_4] : memref<256x128xbf16, #tpu.memory_space<vmem>>, vector<256x128xbf16>
    %cst_5 = arith.constant dense<0.000000e+00> : vector<8x128xf32>
    %4 = tpu.matmul %0, %3, %cst_5 {dimension_numbers = #tpu.dot_dimension_numbers<[1], [0], [0], [1], [0, 0, 1, 1], [], []>} : vector<8x256xbf16>, vector<256x128xbf16>, vector<8x128xf32> -> vector<8x128xf32>
    %c0_6 = arith.constant 0 : index
    %c0_7 = arith.constant 0 : index
    %5 = vector.load %arg3[%c0_6, %c0_7] : memref<1x128xf32, #tpu.memory_space<vmem>>, vector<1x128xf32>
    %6 = vector.broadcast %5 : vector<1x128xf32> to vector<8x128xf32>
    %7 = arith.addf %4, %6 : vector<8x128xf32>
    %8 = arith.truncf %7 : vector<8x128xf32> to vector<8x128xbf16>
    %9 = math.tanh %8 : vector<8x128xbf16>
    %c0_8 = arith.constant 0 : index
    %c0_9 = arith.constant 0 : index
    %10 = vector.load %arg5[%c0_8, %c0_9] : memref<128x128xbf16, #tpu.memory_space<vmem>>, vector<128x128xbf16>
    %cst_10 = arith.constant dense<0.000000e+00> : vector<8x128xf32>
    %11 = tpu.matmul %9, %10, %cst_10 {dimension_numbers = #tpu.dot_dimension_numbers<[1], [0], [0], [1], [0, 0, 1, 1], [], []>} : vector<8x128xbf16>, vector<128x128xbf16>, vector<8x128xf32> -> vector<8x128xf32>
    %12 = arith.addf %2, %11 : vector<8x128xf32>
    %c0_11 = arith.constant 0 : index
    %c0_12 = arith.constant 0 : index
    %13 = vector.load %arg6[%c0_11, %c0_12] : memref<1x128xf32, #tpu.memory_space<vmem>>, vector<1x128xf32>
    %14 = vector.broadcast %13 : vector<1x128xf32> to vector<8x128xf32>
    %15 = arith.addf %12, %14 : vector<8x128xf32>
    %cst_13 = arith.constant dense<0xFF800000> : vector<8xf32>
    %16 = vector.multi_reduction <maximumf>, %15, %cst_13 [1] : vector<8x128xf32> to vector<8xf32>
    %17 = vector.shape_cast %16 : vector<8xf32> to vector<8x1xf32>
    %18 = vector.broadcast %17 : vector<8x1xf32> to vector<8x128xf32>
    %19 = arith.subf %15, %18 : vector<8x128xf32>
    %20 = math.exp %19 : vector<8x128xf32>
    %cst_14 = arith.constant dense<0.000000e+00> : vector<8xf32>
    %21 = vector.multi_reduction <add>, %20, %cst_14 [1] : vector<8x128xf32> to vector<8xf32>
    %22 = vector.shape_cast %21 : vector<8xf32> to vector<8x1xf32>
    %23 = math.log %22 : vector<8x1xf32>
    %24 = arith.addf %17, %23 : vector<8x1xf32>
    %25 = vector.broadcast %24 : vector<8x1xf32> to vector<8x128xf32>
    %26 = arith.subf %15, %25 : vector<8x128xf32>
    %c0_15 = arith.constant 0 : index
    %c0_16 = arith.constant 0 : index
    %27 = vector.load %arg7[%c0_15, %c0_16] : memref<8x128xf32, #tpu.memory_space<vmem>>, vector<8x128xf32>
    tpu.vector_store %arg7[%c0_15, %c0_16], %26 {strides = array<i32>} : memref<8x128xf32, #tpu.memory_space<vmem>>, vector<8x128xf32>,
    return
  }
  func.func @transform_0(%arg0: i32) -> (i32, i32) {
    %c0_i32 = arith.constant 0 : i32
    %c0_i32_0 = arith.constant 0 : i32
    return %arg0, %c0_i32 : i32, i32
  }
  func.func @transform_1(%arg0: i32) -> (i32, i32) {
    %c0_i32 = arith.constant 0 : i32
    %c0_i32_0 = arith.constant 0 : i32
    %c0_i32_1 = arith.constant 0 : i32
    return %c0_i32, %c0_i32_0 : i32, i32
  }
  func.func @transform_2(%arg0: i32) -> (i32, i32) {
    %c0_i32 = arith.constant 0 : i32
    %c0_i32_0 = arith.constant 0 : i32
    %c0_i32_1 = arith.constant 0 : i32
    return %c0_i32, %c0_i32_0 : i32, i32
  }
  func.func @transform_3(%arg0: i32) -> (i32, i32) {
    %c0_i32 = arith.constant 0 : i32
    %c0_i32_0 = arith.constant 0 : i32
    %c0_i32_1 = arith.constant 0 : i32
    return %c0_i32, %c0_i32_0 : i32, i32
  }
  func.func @transform_4(%arg0: i32) -> (i32, i32) {
    %c0_i32 = arith.constant 0 : i32
    %c0_i32_0 = arith.constant 0 : i32
    %c0_i32_1 = arith.constant 0 : i32
    return %c0_i32, %c0_i32_0 : i32, i32
  }
  func.func @transform_5(%arg0: i32) -> (i32, i32) {
    %c0_i32 = arith.constant 0 : i32
    %c0_i32_0 = arith.constant 0 : i32
    %c0_i32_1 = arith.constant 0 : i32
    return %c0_i32, %c0_i32_0 : i32, i32
  }
  func.func @transform_6(%arg0: i32) -> (i32, i32) {
    %c0_i32 = arith.constant 0 : i32
    %c0_i32_0 = arith.constant 0 : i32
    return %arg0, %c0_i32 : i32, i32
  }
}

</mosaic_0001>

<bundles_post_ra>
// kernel: _forward.1
= control target key start
LH: loop header
LB: loop body
LE: loop exit
PB: predicated region body
PF: predicated region fallthrough
CT: control target
= control target key end

     0   :  { %11 = vsyncpa [#allocation3], 0  ;;  %s888_s0 = inlined_call_operand.vmem [shape: bf16[8,256], index: 0, kind: input, shape index: {}]   ;;  %s889_s1 = inlined_call_operand.vmem [shape: bf16[256,128], index: 1, kind: input, shape index: {}]   ;;  %s890_s2 = inlined_call_operand.vmem [shape: f32[1,128], index: 2, kind: input, shape index: {}]   ;;  %s891_s3 = inlined_call_operand.hbm [shape: bf16[256,128], index: 3, kind: input, shape index: {}]   ;;  %s892_s4 = inlined_call_operand.hbm [shape: bf16[128,128], index: 4, kind: input, shape index: {}]   ;;  %s893_s5 = inlined_call_operand.vmem [shape: f32[1,128], index: 5, kind: input, shape index: {}]   ;;  %s894_s6 = inlined_call_operand.vmem [shape: f32[8,128], index: 6, kind: output, shape index: {}]  }
   0x1   :  { %12 = vsyncpa [#allocation5], 0  ;;  %s754_s21 = smov [#allocation2]   ;;  %s706_s25 = scalar_lea.hbm %s891_s3, 2048 }
   0x2   :  { %s24_s22 = sshll.u32 %s754_s21, 4  ;;  %p707_p0 = scmp.ne.s32.totalorder %s891_s3, %s706_s25  ;;  %s25_s22 = int_to_ptr.vmem [resolvable:$true] %s24_s22 }
   0x3   :  { %p710_p1 = scmp.lt.u32.totalorder %s706_s25, %s891_s3 }
   0x5   :  { %p712_p2 = pnand %p710_p1, %p707_p0 }
   0x7   :  { %715 = shalt.err (!%p712_p2)
}
   0x8   :  { %s716_s30 = scalar_lea.vmem %s25_s22, 2048  ;;  %p721_p4 = scmp.lt.s32.totalorder %s25_s22, %s25_s22 }
   0x9   :  { %p717_p3 = scmp.ne.s32.totalorder %s25_s22, %s716_s30  ;;  %p722_p5 = scmp.lt.s32.totalorder %s716_s30, %s716_s30 }
   0xb   :  { %p723_p6 = por %p722_p5, %p721_p4 }
   0xd   :  { %p724_p7 = pnand %p723_p6, %p717_p3 }
   0xf   :  { %727 = shalt.err (!%p724_p7)
}
  0x10   :  { %s755_s7 = smov 64   ;;  %s756_s8 = smov 4  }
  0x11   :  { %30 = dma.hbm_to_vmem [thread:$0]  %s891_s3, 2048, %s25_s22, [#allocation3], %s755_s7, %s755_s7, %s756_s8  }
  0x12   :  { %s757_s11 = smov [#allocation4]   ;;  %s728_s15 = scalar_lea.hbm %s892_s4, 1024 }
  0x13   :  { %s36_s12 = sshll.u32 %s757_s11, 4  ;;  %p729_p8 = scmp.ne.s32.totalorder %s892_s4, %s728_s15  ;;  %s37_s12 = int_to_ptr.vmem [resolvable:$true] %s36_s12 }
  0x14   :  { %p732_p9 = scmp.lt.u32.totalorder %s728_s15, %s892_s4 }
  0x16   :  { %p734_p10 = pnand %p732_p9, %p729_p8 }
  0x18   :  { %737 = shalt.err (!%p734_p10)
}
  0x19   :  { %s738_s20 = scalar_lea.vmem %s37_s12, 1024  ;;  %p743_p12 = scmp.lt.s32.totalorder %s37_s12, %s37_s12 }
  0x1a   :  { %p739_p11 = scmp.ne.s32.totalorder %s37_s12, %s738_s20  ;;  %p744_p13 = scmp.lt.s32.totalorder %s738_s20, %s738_s20 }
  0x1c   :  { %p745_p0 = por %p744_p13, %p743_p12 }
  0x1e   :  { %p746_p1 = pnand %p745_p0, %p739_p11 }
  0x20   :  { %749 = shalt.err (!%p746_p1)
}
  0x21   :  { %42 = dma.hbm_to_vmem [thread:$0]  %s892_s4, 1024, %s37_s12, [#allocation5], %s755_s7, %s755_s7, %s756_s8  }
  0x22   :  { %750 = dma.done.wait [#allocation3], 2048  }
  0x23   :  { %751 = vsyncadd [#allocation3], 4294965248 }
  0x24   :  { %752 = dma.done.wait [#allocation5], 1024  }
  0x25   :  { %753 = vsyncadd [#allocation5], 4294966272  ;;  %v758_v0 = vmov 0.0   ;;  %v658_v1 = vld [vmem:[%s889_s1 + $0x40] sm:$0xff]   ;;  %v660_v3 = vld [vmem:[%s889_s1 + $0x48] sm:$0xff]   ;;  %vm759_vm0 = vmmov 0  }
  0x26   :  { %632 = vmatprep.subr.bf16.mxu1 %v758_v0  ;;  %v659_v2 = vld [vmem:[%s889_s1] sm:$0xff]   ;;  %579 = vmatprep.subr.bf16.mxu0 %v658_v1  ;;  %v661_v4 = vld [vmem:[%s889_s1 + $0x8] sm:$0xff]   ;;  %v662_v5 = vld [vmem:[%s889_s1 + $0x50] sm:$0xff]  }
  0x27   :  { %580 = vmatpush3.bf16.msra.mxu0 %v659_v2  ;;  %v663_v6 = vld [vmem:[%s889_s1 + $0x10] sm:$0xff]   ;;  %v664_v7 = vld [vmem:[%s889_s1 + $0x58] sm:$0xff]   ;;  %v666_v9 = vld [vmem:[%s889_s1 + $0x60] sm:$0xff]   ;;  %648 = vmatprep.mubr.msk.bf16.mxu1 %vm759_vm0, %v758_v0 }
  0x28   :  { %581 = vmatprep.subr.bf16.mxu0 %v660_v3  ;;  %v665_v8 = vld [vmem:[%s889_s1 + $0x18] sm:$0xff]   ;;  %v667_v10 = vld [vmem:[%s889_s1 + $0x20] sm:$0xff]   ;;  %v668_v11 = vld [vmem:[%s889_s1 + $0x68] sm:$0xff]  }
  0x29   :  { %v52_v12 = vld [vmem:[%s888_s0] sm:$0xff]  ;;  %v669_v14 = vld [vmem:[%s889_s1 + $0x28] sm:$0xff]   ;;  %v670_v15 = vld [vmem:[%s889_s1 + $0x70] sm:$0xff]  }
  0x2a   :  { %v537_v13 = vcombine.high %v52_v12, %v52_v12  ;;  %v680_v16 = vld [vmem:[#allocation4] sm:$0xff]   ;;  %v671_v17 = vld [vmem:[%s889_s1 + $0x30] sm:$0xff]   ;;  %v672_v18 = vld [vmem:[%s889_s1 + $0x78] sm:$0xff]   ;;  %v536_v24 = vcombine.low %v52_v12, %v52_v12 }
  0x2b   :  { %582 = vmatpush3.bf16.msra.mxu0 %v661_v4  ;;  %633 = vmatpush3.bf16.msra.mxu1 %v680_v16  ;;  %v683_v19 = vld [vmem:[#allocation4 + $0x8] sm:$0xff]   ;;  %v673_v20 = vld [vmem:[%s889_s1 + $0x38] sm:$0xff]   ;;  %v686_v21 = vld [vmem:[#allocation4 + $0x10] sm:$0xff]  }
  0x2c   :  { %583 = vmatprep.subr.bf16.mxu0 %v662_v5  ;;  %259 = vmatprep.mubr.bf16.mxu0 %v537_v13  ;;  %v676_v22 = vld [vmem:[#allocation2 + $0x40] sm:$0xff]   ;;  %v678_v25 = vld [vmem:[#allocation2 + $0x48] sm:$0xff]   ;;  %v681_v27 = vld [vmem:[#allocation2 + $0x50] sm:$0xff]  }
  0x2d   :  { %634 = vmatprep.subr.bf16.mxu1 %v758_v0  ;;  %v677_v23 = vld [vmem:[#allocation2] sm:$0xff]   ;;  %v679_v26 = vld [vmem:[#allocation2 + $0x8] sm:$0xff]   ;;  %v682_v28 = vld [vmem:[#allocation2 + $0x10] sm:$0xff]  }
  0x2e   :  { %v684_v29 = vld [vmem:[#allocation2 + $0x58] sm:$0xff]   ;;  %v687_v31 = vld [vmem:[#allocation2 + $0x60] sm:$0xff]   ;;  %v690_v34 = vld [vmem:[#allocation2 + $0x68] sm:$0xff]  }
  0x2f   :  { %584 = vmatpush3.bf16.msra.mxu0 %v663_v6  ;;  %635 = vmatpush3.bf16.msra.mxu1 %v683_v19  ;;  %v685_v30 = vld [vmem:[#allocation2 + $0x18] sm:$0xff]   ;;  %v688_v32 = vld [vmem:[#allocation2 + $0x20] sm:$0xff]   ;;  %v691_v35 = vld [vmem:[#allocation2 + $0x28] sm:$0xff]  }
  0x30   :  { %585 = vmatprep.subr.bf16.mxu0 %v664_v7  ;;  %636 = vmatprep.subr.bf16.mxu1 %v758_v0  ;;  %v689_v33 = vld [vmem:[#allocation4 + $0x18] sm:$0xff]   ;;  %v692_v36 = vld [vmem:[#allocation4 + $0x20] sm:$0xff]   ;;  %v693_v37 = vld [vmem:[#allocation2 + $0x70] sm:$0xff]  }
  0x31   :  { %v694_v38 = vld [vmem:[#allocation2 + $0x30] sm:$0xff]   ;;  %v695_v39 = vld [vmem:[#allocation4 + $0x28] sm:$0xff]   ;;  %v696_v40 = vld [vmem:[#allocation2 + $0x78] sm:$0xff]  }
  0x32   :  { %v697_v41 = vld [vmem:[#allocation2 + $0x38] sm:$0xff]   ;;  %v698_v42 = vld [vmem:[#allocation4 + $0x30] sm:$0xff]   ;;  %v535_v45 = vld [vmem:[%s890_s2] ss:$0 sm:$0xff] }
  0x33   :  { %586 = vmatpush3.bf16.msra.mxu0 %v665_v8  ;;  %637 = vmatpush3.bf16.msra.mxu1 %v686_v21  ;;  %v699_v43 = vld [vmem:[#allocation4 + $0x38] sm:$0xff]   ;;  %v578_v59 = vld [vmem:[%s893_s5] ss:$0 sm:$0xff] }
  0x34   :  { %587 = vmatprep.subr.bf16.mxu0 %v666_v9  ;;  %638 = vmatprep.subr.bf16.mxu1 %v758_v0 }
  0x37   :  { %588 = vmatpush3.bf16.msra.mxu0 %v667_v10  ;;  %639 = vmatpush3.bf16.msra.mxu1 %v689_v33 }
  0x38   :  { %589 = vmatprep.subr.bf16.mxu0 %v668_v11  ;;  %640 = vmatprep.subr.bf16.mxu1 %v758_v0 }
  0x3b   :  { %590 = vmatpush3.bf16.msra.mxu0 %v669_v14  ;;  %641 = vmatpush3.bf16.msra.mxu1 %v692_v36 }
  0x3c   :  { %591 = vmatprep.subr.bf16.mxu0 %v670_v15  ;;  %642 = vmatprep.subr.bf16.mxu1 %v758_v0 }
  0x3f   :  { %592 = vmatpush3.bf16.msra.mxu0 %v671_v17  ;;  %643 = vmatpush3.bf16.msra.mxu1 %v695_v39 }
  0x40   :  { %593 = vmatprep.subr.bf16.mxu0 %v672_v18  ;;  %644 = vmatprep.subr.bf16.mxu1 %v758_v0 }
  0x43   :  { %594 = vmatpush3.bf16.msra.mxu0 %v673_v20  ;;  %645 = vmatpush3.bf16.msra.mxu1 %v698_v42 }
  0x44   :  { %610 = vmatprep.subr.bf16.mxu0 %v676_v22  ;;  %646 = vmatprep.subr.bf16.mxu1 %v758_v0 }
  0x46   :  { %260 = vmatmul.mubr.bf16.vlgmr.msra.gmra.mrb[0].mxu0 %v536_v24 }
  0x47   :  { %611 = vmatpush3.bf16.msra.mxu0 %v677_v23  ;;  %501 = vmatprep.mubr.bf16.mxu0 %v537_v13 }
  0x48   :  { %612 = vmatprep.subr.bf16.mxu0 %v678_v25  ;;  %647 = vmatpush3.bf16.msra.mxu1 %v699_v43 }
  0x4b   :  { %613 = vmatpush3.bf16.msra.mxu0 %v679_v26 }
  0x4c   :  { %614 = vmatprep.subr.bf16.mxu0 %v681_v27 }
  0x4f   :  { %615 = vmatpush3.bf16.msra.mxu0 %v682_v28 }
  0x50   :  { %616 = vmatprep.subr.bf16.mxu0 %v684_v29 }
  0x53   :  { %617 = vmatpush3.bf16.msra.mxu0 %v685_v30 }
  0x54   :  { %618 = vmatprep.subr.bf16.mxu0 %v687_v31 }
  0x57   :  { %619 = vmatpush3.bf16.msra.mxu0 %v688_v32 }
  0x58   :  { %620 = vmatprep.subr.bf16.mxu0 %v690_v34 }
  0x5b   :  { %621 = vmatpush3.bf16.msra.mxu0 %v691_v35 }
  0x5c   :  { %622 = vmatprep.subr.bf16.mxu0 %v693_v37 }
  0x5f   :  { %623 = vmatpush3.bf16.msra.mxu0 %v694_v38 }
  0x60   :  { %624 = vmatprep.subr.bf16.mxu0 %v696_v40 }
  0x63   :  { %625 = vmatpush3.bf16.msra.mxu0 %v697_v41 }
  0x66   :  { %502 = vmatmul.mubr.bf16.vlgmr.msra.gmra.mrb[4].mxu0 %v536_v24 }
 0x119   :  { %v595_v44 = vpop.f32.mrb[0].mxu0 }
 0x11a   :  { %v596_v46 = vpop.f32.mrb[1].mxu0 }
 0x11b   :  { %v597_v47 = vadd.f32 %v596_v46, %v595_v44  ;;  %v598_v48 = vpop.f32.mrb[2].mxu0 }
 0x11c   :  { %v599_v49 = vpop.f32.mrb[3].mxu0 }
 0x11d   :  { %v262_v50 = vadd.f32 %v597_v47, %v535_v45 }
 0x11f   :  { %v267_v51 = vpack.c.bf16 %v262_v50, %v262_v50 }
 0x121   :  { %700 = vtanh.bf16 %v267_v51 }
 0x12c   :  { %v701_v52 = vpop.eup %700 }
 0x12d   :  { %649 = vmatmul.mubr.bf16.vlgmr.msra.gmra.mrb[0].mxu1 %v701_v52 }
 0x139   :  { %v626_v53 = vpop.f32.mrb[4].mxu0 }
 0x13a   :  { %v627_v54 = vpop.f32.mrb[5].mxu0 }
 0x13b   :  { %v628_v55 = vadd.f32 %v627_v54, %v626_v53  ;;  %v629_v56 = vpop.f32.mrb[6].mxu0 }
 0x13c   :  { %v630_v57 = vpop.f32.mrb[7].mxu0 }
 0x200   :  { %v367_v58 = vpop.f32.mrb[0].mxu1 }
 0x201   :  { %v504_v60 = vadd.f32 %v628_v55, %v367_v58  ;;  %v650_v61 = vpop.f32.mrb[1].mxu1 }
 0x202   :  { %v370_v62 = vpop.f32.mrb[2].mxu1 }
 0x203   :  { %v516_v63 = vadd.f32 %v578_v59, %v504_v60  ;;  %v651_v0 = vpop.f32.mrb[3].mxu1 }
 0x205   :  { %517 = vmax.xlane.f32.xlu0 %v516_v63 }
 0x292   :  { %v518_v1 = vpop.xlane.xlu0 %517 }
 0x293   :  { %v519_v2 = vsub.f32 %v516_v63, %v518_v1 }
 0x295   :  { %v520_v3 = vmul.f32 1.442695, %v519_v2 }
 0x297   :  { %702 = vpow2.f32 %v520_v3 }
 0x2a1   :  { %v703_v4 = vpop.eup %702 }
 0x2a2   :  { %522 = vadd.xlane.f32.xlu0 %v703_v4 }
 0x32f   :  { %v523_v5 = vpop.xlane.xlu0 %522 }
 0x330   :  { %704 = vlog2.f32 %v523_v5 }
 0x33a   :  { %v705_v6 = vpop.eup %704 }
 0x33b   :  { %v525_v7 = vmul.f32 0.6931472, %v705_v6 }
 0x33d   :  { %v526_v8 = vadd.f32 %v525_v7, %v518_v1 }
 0x33f   :  { %v527_v9 = vsub.f32 %v516_v63, %v526_v8 }
 0x341   :  { %528 = vst [vmem:[%s894_s6] sm:$0xff] %v527_v9 }
 0x342   :  { %533 = vsyncpa [#allocation3], 1 }
 0x343   :  { %534 = vsyncpa [#allocation5], 1 }

// kernel: _forward.1
= control target key start
LH: loop header
LB: loop body
LE: loop exit
PB: predicated region body
PF: predicated region fallthrough
CT: control target
= control target key end

     0   :  { %11 = vsyncpa [#allocation3], 0  ;;  %s888_s0 = inlined_call_operand.vmem [shape: bf16[8,256], index: 0, kind: input, shape index: {}]   ;;  %s889_s1 = inlined_call_operand.vmem [shape: bf16[256,128], index: 1, kind: input, shape index: {}]   ;;  %s890_s2 = inlined_call_operand.vmem [shape: f32[1,128], index: 2, kind: input, shape index: {}]   ;;  %s891_s3 = inlined_call_operand.hbm [shape: bf16[256,128], index: 3, kind: input, shape index: {}]   ;;  %s892_s4 = inlined_call_operand.hbm [shape: bf16[128,128], index: 4, kind: input, shape index: {}]   ;;  %s893_s5 = inlined_call_operand.vmem [shape: f32[1,128], index: 5, kind: input, shape index: {}]   ;;  %s894_s6 = inlined_call_operand.vmem [shape: f32[8,128], index: 6, kind: output, shape index: {}]  }
   0x1   :  { %12 = vsyncpa [#allocation5], 0  ;;  %s754_s21 = smov [#allocation2]   ;;  %s706_s25 = scalar_lea.hbm %s891_s3, 2048 }
   0x2   :  { %s24_s22 = sshll.u32 %s754_s21, 4  ;;  %p707_p0 = scmp.ne.s32.totalorder %s891_s3, %s706_s25  ;;  %s25_s22 = int_to_ptr.vmem [resolvable:$true] %s24_s22 }
   0x3   :  { %p710_p1 = scmp.lt.u32.totalorder %s706_s25, %s891_s3 }
   0x5   :  { %p712_p2 = pnand %p710_p1, %p707_p0 }
   0x7   :  { %715 = shalt.err (!%p712_p2)
}
   0x8   :  { %s716_s30 = scalar_lea.vmem %s25_s22, 2048  ;;  %p721_p4 = scmp.lt.s32.totalorder %s25_s22, %s25_s22 }
   0x9   :  { %p717_p3 = scmp.ne.s32.totalorder %s25_s22, %s716_s30  ;;  %p722_p5 = scmp.lt.s32.totalorder %s716_s30, %s716_s30 }
   0xb   :  { %p723_p6 = por %p722_p5, %p721_p4 }
   0xd   :  { %p724_p7 = pnand %p723_p6, %p717_p3 }
   0xf   :  { %727 = shalt.err (!%p724_p7)
}
  0x10   :  { %s755_s7 = smov 64   ;;  %s756_s8 = smov 4  }
  0x11   :  { %30 = dma.hbm_to_vmem [thread:$0]  %s891_s3, 2048, %s25_s22, [#allocation3], %s755_s7, %s755_s7, %s756_s8  }
  0x12   :  { %s757_s11 = smov [#allocation4]   ;;  %s728_s15 = scalar_lea.hbm %s892_s4, 1024 }
  0x13   :  { %s36_s12 = sshll.u32 %s757_s11, 4  ;;  %p729_p8 = scmp.ne.s32.totalorder %s892_s4, %s728_s15  ;;  %s37_s12 = int_to_ptr.vmem [resolvable:$true] %s36_s12 }
  0x14   :  { %p732_p9 = scmp.lt.u32.totalorder %s728_s15, %s892_s4 }
  0x16   :  { %p734_p10 = pnand %p732_p9, %p729_p8 }
  0x18   :  { %737 = shalt.err (!%p734_p10)
}
  0x19   :  { %s738_s20 = scalar_lea.vmem %s37_s12, 1024  ;;  %p743_p12 = scmp.lt.s32.totalorder %s37_s12, %s37_s12 }
  0x1a   :  { %p739_p11 = scmp.ne.s32.totalorder %s37_s12, %s738_s20  ;;  %p744_p13 = scmp.lt.s32.totalorder %s738_s20, %s738_s20 }
  0x1c   :  { %p745_p0 = por %p744_p13, %p743_p12 }
  0x1e   :  { %p746_p1 = pnand %p745_p0, %p739_p11 }
  0x20   :  { %749 = shalt.err (!%p746_p1)
}
  0x21   :  { %42 = dma.hbm_to_vmem [thread:$0]  %s892_s4, 1024, %s37_s12, [#allocation5], %s755_s7, %s755_s7, %s756_s8  }
  0x22   :  { %750 = dma.done.wait [#allocation3], 2048  }
  0x23   :  { %751 = vsyncadd [#allocation3], 4294965248 }
  0x24   :  { %752 = dma.done.wait [#allocation5], 1024  }
  0x25   :  { %753 = vsyncadd [#allocation5], 4294966272  ;;  %v758_v0 = vmov 0.0   ;;  %v658_v1 = vld [vmem:[%s889_s1 + $0x40] sm:$0xff]   ;;  %v660_v3 = vld [vmem:[%s889_s1 + $0x48] sm:$0xff]   ;;  %vm759_vm0 = vmmov 0  }
  0x26   :  { %632 = vmatprep.subr.bf16.mxu1 %v758_v0  ;;  %v659_v2 = vld [vmem:[%s889_s1] sm:$0xff]   ;;  %579 = vmatprep.subr.bf16.mxu0 %v658_v1  ;;  %v661_v4 = vld [vmem:[%s889_s1 + $0x8] sm:$0xff]   ;;  %v662_v5 = vld [vmem:[%s889_s1 + $0x50] sm:$0xff]  }
  0x27   :  { %580 = vmatpush3.bf16.msra.mxu0 %v659_v2  ;;  %v663_v6 = vld [vmem:[%s889_s1 + $0x10] sm:$0xff]   ;;  %v664_v7 = vld [vmem:[%s889_s1 + $0x58] sm:$0xff]   ;;  %v666_v9 = vld [vmem:[%s889_s1 + $0x60] sm:$0xff]   ;;  %648 = vmatprep.mubr.msk.bf16.mxu1 %vm759_vm0, %v758_v0 }
  0x28   :  { %581 = vmatprep.subr.bf16.mxu0 %v660_v3  ;;  %v665_v8 = vld [vmem:[%s889_s1 + $0x18] sm:$0xff]   ;;  %v667_v10 = vld [vmem:[%s889_s1 + $0x20] sm:$0xff]   ;;  %v668_v11 = vld [vmem:[%s889_s1 + $0x68] sm:$0xff]  }
  0x29   :  { %v52_v12 = vld [vmem:[%s888_s0] sm:$0xff]  ;;  %v669_v14 = vld [vmem:[%s889_s1 + $0x28] sm:$0xff]   ;;  %v670_v15 = vld [vmem:[%s889_s1 + $0x70] sm:$0xff]  }
  0x2a   :  { %v537_v13 = vcombine.high %v52_v12, %v52_v12  ;;  %v680_v16 = vld [vmem:[#allocation4] sm:$0xff]   ;;  %v671_v17 = vld [vmem:[%s889_s1 + $0x30] sm:$0xff]   ;;  %v672_v18 = vld [vmem:[%s889_s1 + $0x78] sm:$0xff]   ;;  %v536_v24 = vcombine.low %v52_v12, %v52_v12 }
  0x2b   :  { %582 = vmatpush3.bf16.msra.mxu0 %v661_v4  ;;  %633 = vmatpush3.bf16.msra.mxu1 %v680_v16  ;;  %v683_v19 = vld [vmem:[#allocation4 + $0x8] sm:$0xff]   ;;  %v673_v20 = vld [vmem:[%s889_s1 + $0x38] sm:$0xff]   ;;  %v686_v21 = vld [vmem:[#allocation4 + $0x10] sm:$0xff]  }
  0x2c   :  { %583 = vmatprep.subr.bf16.mxu0 %v662_v5  ;;  %259 = vmatprep.mubr.bf16.mxu0 %v537_v13  ;;  %v676_v22 = vld [vmem:[#allocation2 + $0x40] sm:$0xff]   ;;  %v678_v25 = vld [vmem:[#allocation2 + $0x48] sm:$0xff]   ;;  %v681_v27 = vld [vmem:[#allocation2 + $0x50] sm:$0xff]  }
  0x2d   :  { %634 = vmatprep.subr.bf16.mxu1 %v758_v0  ;;  %v677_v23 = vld [vmem:[#allocation2] sm:$0xff]   ;;  %v679_v26 = vld [vmem:[#allocation2 + $0x8] sm:$0xff]   ;;  %v682_v28 = vld [vmem:[#allocation2 + $0x10] sm:$0xff]  }
  0x2e   :  { %v684_v29 = vld [vmem:[#allocation2 + $0x58] sm:$0xff]   ;;  %v687_v31 = vld [vmem:[#allocation2 + $0x60] sm:$0xff]   ;;  %v690_v34 = vld [vmem:[#allocation2 + $0x68] sm:$0xff]  }
  0x2f   :  { %584 = vmatpush3.bf16.msra.mxu0 %v663_v6  ;;  %635 = vmatpush3.bf16.msra.mxu1 %v683_v19  ;;  %v685_v30 = vld [vmem:[#allocation2 + $0x18] sm:$0xff]   ;;  %v688_v32 = vld [vmem:[#allocation2 + $0x20] sm:$0xff]   ;;  %v691_v35 = vld [vmem:[#allocation2 + $0x28] sm:$0xff]  }
  0x30   :  { %585 = vmatprep.subr.bf16.mxu0 %v664_v7  ;;  %636 = vmatprep.subr.bf16.mxu1 %v758_v0  ;;  %v689_v33 = vld [vmem:[#allocation4 + $0x18] sm:$0xff]   ;;  %v692_v36 = vld [vmem:[#allocation4 + $0x20] sm:$0xff]   ;;  %v693_v37 = vld [vmem:[#allocation2 + $0x70] sm:$0xff]  }
  0x31   :  { %v694_v38 = vld [vmem:[#allocation2 + $0x30] sm:$0xff]   ;;  %v695_v39 = vld [vmem:[#allocation4 + $0x28] sm:$0xff]   ;;  %v696_v40 = vld [vmem:[#allocation2 + $0x78] sm:$0xff]  }
  0x32   :  { %v697_v41 = vld [vmem:[#allocation2 + $0x38] sm:$0xff]   ;;  %v698_v42 = vld [vmem:[#allocation4 + $0x30] sm:$0xff]   ;;  %v535_v45 = vld [vmem:[%s890_s2] ss:$0 sm:$0xff] }
  0x33   :  { %586 = vmatpush3.bf16.msra.mxu0 %v665_v8  ;;  %637 = vmatpush3.bf16.msra.mxu1 %v686_v21  ;;  %v699_v43 = vld [vmem:[#allocation4 + $0x38] sm:$0xff]   ;;  %v578_v59 = vld [vmem:[%s893_s5] ss:$0 sm:$0xff] }
  0x34   :  { %587 = vmatprep.subr.bf16.mxu0 %v666_v9  ;;  %638 = vmatprep.subr.bf16.mxu1 %v758_v0 }
  0x37   :  { %588 = vmatpush3.bf16.msra.mxu0 %v667_v10  ;;  %639 = vmatpush3.bf16.msra.mxu1 %v689_v33 }
  0x38   :  { %589 = vmatprep.subr.bf16.mxu0 %v668_v11  ;;  %640 = vmatprep.subr.bf16.mxu1 %v758_v0 }
  0x3b   :  { %590 = vmatpush3.bf16.msra.mxu0 %v669_v14  ;;  %641 = vmatpush3.bf16.msra.mxu1 %v692_v36 }
  0x3c   :  { %591 = vmatprep.subr.bf16.mxu0 %v670_v15  ;;  %642 = vmatprep.subr.bf16.mxu1 %v758_v0 }
  0x3f   :  { %592 = vmatpush3.bf16.msra.mxu0 %v671_v17  ;;  %643 = vmatpush3.bf16.msra.mxu1 %v695_v39 }
  0x40   :  { %593 = vmatprep.subr.bf16.mxu0 %v672_v18  ;;  %644 = vmatprep.subr.bf16.mxu1 %v758_v0 }
  0x43   :  { %594 = vmatpush3.bf16.msra.mxu0 %v673_v20  ;;  %645 = vmatpush3.bf16.msra.mxu1 %v698_v42 }
  0x44   :  { %610 = vmatprep.subr.bf16.mxu0 %v676_v22  ;;  %646 = vmatprep.subr.bf16.mxu1 %v758_v0 }
  0x46   :  { %260 = vmatmul.mubr.bf16.vlgmr.msra.gmra.mrb[0].mxu0 %v536_v24 }
  0x47   :  { %611 = vmatpush3.bf16.msra.mxu0 %v677_v23  ;;  %501 = vmatprep.mubr.bf16.mxu0 %v537_v13 }
  0x48   :  { %612 = vmatprep.subr.bf16.mxu0 %v678_v25  ;;  %647 = vmatpush3.bf16.msra.mxu1 %v699_v43 }
  0x4b   :  { %613 = vmatpush3.bf16.msra.mxu0 %v679_v26 }
  0x4c   :  { %614 = vmatprep.subr.bf16.mxu0 %v681_v27 }
  0x4f   :  { %615 = vmatpush3.bf16.msra.mxu0 %v682_v28 }
  0x50   :  { %616 = vmatprep.subr.bf16.mxu0 %v684_v29 }
  0x53   :  { %617 = vmatpush3.bf16.msra.mxu0 %v685_v30 }
  0x54   :  { %618 = vmatprep.subr.bf16.mxu0 %v687_v31 }
  0x57   :  { %619 = vmatpush3.bf16.msra.mxu0 %v688_v32 }
  0x58   :  { %620 = vmatprep.subr.bf16.mxu0 %v690_v34 }
  0x5b   :  { %621 = vmatpush3.bf16.msra.mxu0 %v691_v35 }
  0x5c   :  { %622 = vmatprep.subr.bf16.mxu0 %v693_v37 }
  0x5f   :  { %623 = vmatpush3.bf16.msra.mxu0 %v694_v38 }
  0x60   :  { %624 = vmatprep.subr.bf16.mxu0 %v696_v40 }
  0x63   :  { %625 = vmatpush3.bf16.msra.mxu0 %v697_v41 }
  0x66   :  { %502 = vmatmul.mubr.bf16.vlgmr.msra.gmra.mrb[4].mxu0 %v536_v24 }
 0x119   :  { %v595_v44 = vpop.f32.mrb[0].mxu0 }
 0x11a   :  { %v596_v46 = vpop.f32.mrb[1].mxu0 }
 0x11b   :  { %v597_v47 = vadd.f32 %v596_v46, %v595_v44  ;;  %v598_v48 = vpop.f32.mrb[2].mxu0 }
 0x11c   :  { %v599_v49 = vpop.f32.mrb[3].mxu0 }
 0x11d   :  { %v262_v50 = vadd.f32 %v597_v47, %v535_v45 }
 0x11f   :  { %v267_v51 = vpack.c.bf16 %v262_v50, %v262_v50 }
 0x121   :  { %700 = vtanh.bf16 %v267_v51 }
 0x12c   :  { %v701_v52 = vpop.eup %700 }
 0x12d   :  { %649 = vmatmul.mubr.bf16.vlgmr.msra.gmra.mrb[0].mxu1 %v701_v52 }
 0x139   :  { %v626_v53 = vpop.f32.mrb[4].mxu0 }
 0x13a   :  { %v627_v54 = vpop.f32.mrb[5].mxu0 }
 0x13b   :  { %v628_v55 = vadd.f32 %v627_v54, %v626_v53  ;;  %v629_v56 = vpop.f32.mrb[6].mxu0 }
 0x13c   :  { %v630_v57 = vpop.f32.mrb[7].mxu0 }
 0x200   :  { %v367_v58 = vpop.f32.mrb[0].mxu1 }
 0x201   :  { %v504_v60 = vadd.f32 %v628_v55, %v367_v58  ;;  %v650_v61 = vpop.f32.mrb[1].mxu1 }
 0x202   :  { %v370_v62 = vpop.f32.mrb[2].mxu1 }
 0x203   :  { %v516_v63 = vadd.f32 %v578_v59, %v504_v60  ;;  %v651_v0 = vpop.f32.mrb[3].mxu1 }
 0x205   :  { %517 = vmax.xlane.f32.xlu0 %v516_v63 }
 0x292   :  { %v518_v1 = vpop.xlane.xlu0 %517 }
 0x293   :  { %v519_v2 = vsub.f32 %v516_v63, %v518_v1 }
 0x295   :  { %v520_v3 = vmul.f32 1.442695, %v519_v2 }
 0x297   :  { %702 = vpow2.f32 %v520_v3 }
 0x2a1   :  { %v703_v4 = vpop.eup %702 }
 0x2a2   :  { %522 = vadd.xlane.f32.xlu0 %v703_v4 }
 0x32f   :  { %v523_v5 = vpop.xlane.xlu0 %522 }
 0x330   :  { %704 = vlog2.f32 %v523_v5 }
 0x33a   :  { %v705_v6 = vpop.eup %704 }
 0x33b   :  { %v525_v7 = vmul.f32 0.6931472, %v705_v6 }
 0x33d   :  { %v526_v8 = vadd.f32 %v525_v7, %v518_v1 }
 0x33f   :  { %v527_v9 = vsub.f32 %v516_v63, %v526_v8 }
 0x341   :  { %528 = vst [vmem:[%s894_s6] sm:$0xff] %v527_v9 }
 0x342   :  { %533 = vsyncpa [#allocation3], 1 }
 0x343   :  { %534 = vsyncpa [#allocation5], 1 }

</bundles_post_ra>
